<compile_context>
chip_gen: v5e
topology: v5e:2x2
jax: 0.10.0
libtpu: 0.0.40
codegen_flags: <defaults>
</compile_context>

<pallas_src>
import math
import functools

import jax
import jax.numpy as jnp
from jax import lax
from jax.experimental import pallas as pl
from jax.experimental.pallas import tpu as pltpu

_LN_10000 = math.log(10000.0)


def build_pe_table(d_model: int, max_len: int = 5000) -> jnp.ndarray:
    """Reference sin/cos positional-encoding table, shape [max_len, 1, d_model]."""
    position = jnp.arange(0, max_len, dtype=jnp.float32)[:, None]
    div_term = jnp.exp(
        jnp.arange(0, d_model, 2, dtype=jnp.float32) * (-_LN_10000 / d_model)
    )
    angles = position * div_term
    pe = jnp.zeros((max_len, d_model), dtype=jnp.float32)
    pe = pe.at[:, 0::2].set(jnp.sin(angles))
    pe = pe.at[:, 1::2].set(jnp.cos(angles))
    return pe[:, None, :]


def _pos_enc_kernel(*refs, d_model, training, threshold, scale):
    """One grid step over a lane-dense [tile_s, B*D] block."""
    if training:
        x_ref, bits_ref, o_ref = refs
    else:
        x_ref, o_ref = refs
        bits_ref = None

    tile_s, bd = x_ref.shape

    # Per-lane constants (depend only on embed index d = lane % d_model):
    #   inv_freq = exp(-(2i) * ln(10000)/d_model), 2i = d - (d % 2)
    #   phase    = pi/2 for odd d (cos(a) == sin(a + pi/2)), 0 for even d.
    lane = lax.broadcasted_iota(jnp.int32, (1, bd), 1)
    d = lane % d_model
    odd = d % 2
    inv_freq = jnp.exp((d - odd).astype(jnp.float32) * (-_LN_10000 / d_model))
    phase = odd.astype(jnp.float32) * jnp.float32(math.pi / 2.0)

    # Absolute sequence position per row (sublane iota).
    pos = (pl.program_id(0) * tile_s
           + lax.broadcasted_iota(jnp.int32, (tile_s, 1), 0)).astype(jnp.float32)

    pe = jnp.sin(pos * inv_freq + phase)                  # [tile_s, B*D]
    y = x_ref[...].astype(jnp.float32) + pe

    if training:
        # Inverted dropout: keep with prob 1-p, scale kept values by 1/(1-p).
        # Pure integer compare on raw uint32 bits (no shift / float convert).
        keep = bits_ref[...] >= jnp.uint32(threshold)
        y = jnp.where(keep, y * jnp.float32(scale), jnp.float32(0.0))

    o_ref[...] = y.astype(o_ref.dtype)


def _choose_tile_s(seq_len: int, row_bytes: int, target_bytes: int = 2 << 20) -> int:
    """Seq tile giving ~2 MiB blocks with a multiple-of-8 sublane dim."""
    t = max(1, target_bytes // max(1, row_bytes))
    t = max(8, (t // 8) * 8)
    return int(min(seq_len, t))


def positional_encoding(x, *, p: float = 0.1, training: bool = False,
                        rng_key=None, donate_x: bool = False):
    """Forward of the PyTorch PositionalEncoding module.

    x: [seq_len, batch, d_model]. Returns an array of the same shape/dtype.
    """
    S, B, D = x.shape
    assert D % 2 == 0, "d_model must be even (same constraint as the torch module)"
    assert 0.0 <= p < 1.0

    bd = B * D
    x2 = x.reshape(S, bd)                        # fold batch into the lane axis
    row_bytes = bd * 4                           # f32 x/out (and u32 mask) per row
    tile_s = _choose_tile_s(S, row_bytes)
    grid = (pl.cdiv(S, tile_s),)

    use_dropout = bool(training and p > 0.0)
    threshold, scale = 0, 1.0
    operands = [x2]
    in_specs = [pl.BlockSpec((tile_s, bd), lambda i: (i, 0))]
    if use_dropout:
        assert rng_key is not None, "training-mode dropout needs an rng_key"
        # TODO(synk): on a chip-only deployment, switch to in-kernel
        # pltpu.prng_seed/prng_random_bits (zero HBM traffic for the mask);
        # wrapper-side bits are used so the kernel also runs under interpret mode.
        bits = jax.random.bits(rng_key, (S, bd), dtype=jnp.uint32)
        operands.append(bits)
        in_specs.append(pl.BlockSpec((tile_s, bd), lambda i: (i, 0)))
        threshold = min(int(round(p * (1 << 32))), (1 << 32) - 1)
        scale = 1.0 / (1.0 - p)

    kernel = functools.partial(
        _pos_enc_kernel, d_model=D, training=use_dropout,
        threshold=threshold, scale=scale)

    out2 = pl.pallas_call(
        kernel,
        out_shape=jax.ShapeDtypeStruct((S, bd), x.dtype),
        grid=grid,
        in_specs=in_specs,
        out_specs=pl.BlockSpec((tile_s, bd), lambda i: (i, 0)),
        compiler_params=pltpu.CompilerParams(
            dimension_semantics=("parallel",),   # independent steps -> v7x megacore
        ),
        input_output_aliases={0: 0} if donate_x else {},
    )(*operands)

    return out2.reshape(S, B, D)


if __name__ == "__main__":
    # Small shapes consistent with the module: seq=8, batch=2, d_model=32.
    S, B, D = 8, 2, 32
    key = jax.random.PRNGKey(0)
    kx, kd = jax.random.split(key)
    x = jax.random.normal(kx, (S, B, D), dtype=jnp.float32)

    # Eval-mode forward (dropout is identity), matching module.eval() semantics.
    out = jax.block_until_ready(positional_encoding(x, p=0.1, training=False))

    # Plain-JAX reference using the exact torch formula.
    pe = build_pe_table(D, max_len=5000)          # [max_len, 1, D]
    ref = x + pe[:S]
    assert out.shape == (S, B, D)
    assert jnp.allclose(out, ref, atol=1e-4), "mismatch vs reference"

    # Train-mode forward (stochastic, like torch training mode).
    p = 0.1
    out_train = jax.block_until_ready(
        positional_encoding(x, p=p, training=True, rng_key=kd))
    assert out_train.shape == (S, B, D)
    # Every element is either dropped (0) or the kept value scaled by 1/(1-p).
    kept_ok = jnp.abs(out_train - ref / (1.0 - p)) < 1e-3
    dropped = out_train == 0.0
    assert bool(jnp.all(kept_ok | dropped)), "dropout output inconsistent"

    print("KERNEL_OK")
</pallas_src>

<mosaic_0001>
module attributes {stable_mosaic.version = 11 : i64} {
  func.func @_pos_enc_kernel(%arg0: i32, %arg1: memref<8x64xf32, #tpu.memory_space<vmem>>, %arg2: memref<8x64xf32, #tpu.memory_space<vmem>>) attributes {dimension_semantics = [#tpu.dimension_semantics<parallel>], iteration_bounds = array<i64: 1>, scalar_prefetch = 0 : i64, scratch_operands = 0 : i64, tpu.core_type = #tpu.core_type<tc>, window_params = [{transform_indices = @transform_0, window_bounds = array<i64: 8, 64>}, {transform_indices = @transform_1, window_bounds = array<i64: 8, 64>}]} {
    %0 = tpu.iota {dimensions = array<i32: 1>} : vector<1x64xi32>
    %c32_i32 = arith.constant 32 : i32
    %c0_i32 = arith.constant 0 : i32
    %1 = arith.cmpi eq, %c32_i32, %c0_i32 : i32
    %c1_i32 = arith.constant 1 : i32
    %2 = arith.select %1, %c1_i32, %c32_i32 : i32
    %3 = vector.broadcast %2 : i32 to vector<1x64xi32>
    %4 = arith.remsi %0, %3 : vector<1x64xi32>
    %c0_i32_0 = arith.constant 0 : i32
    %5 = vector.broadcast %c0_i32_0 : i32 to vector<1x64xi32>
    %6 = arith.cmpi ne, %4, %5 : vector<1x64xi32>
    %c0_i32_1 = arith.constant 0 : i32
    %7 = vector.broadcast %c0_i32_1 : i32 to vector<1x64xi32>
    %8 = arith.cmpi slt, %4, %7 : vector<1x64xi32>
    %c0_i32_2 = arith.constant 0 : i32
    %9 = arith.cmpi slt, %2, %c0_i32_2 : i32
    %10 = vector.broadcast %9 : i1 to vector<1x64xi1>
    %11 = vector.broadcast %10 : vector<1x64xi1> to vector<1x64xi1>
    %12 = arith.xori %8, %11 : vector<1x64xi1>
    %13 = arith.andi %12, %6 : vector<1x64xi1>
    %14 = vector.broadcast %2 : i32 to vector<1x64xi32>
    %15 = arith.addi %4, %14 : vector<1x64xi32>
    %16 = arith.select %13, %15, %4 : vector<1x64xi1>, vector<1x64xi32>
    %c2_i32 = arith.constant 2 : i32
    %c0_i32_3 = arith.constant 0 : i32
    %17 = arith.cmpi eq, %c2_i32, %c0_i32_3 : i32
    %c1_i32_4 = arith.constant 1 : i32
    %18 = arith.select %17, %c1_i32_4, %c2_i32 : i32
    %19 = vector.broadcast %18 : i32 to vector<1x64xi32>
    %20 = arith.remsi %16, %19 : vector<1x64xi32>
    %c0_i32_5 = arith.constant 0 : i32
    %21 = vector.broadcast %c0_i32_5 : i32 to vector<1x64xi32>
    %22 = arith.cmpi ne, %20, %21 : vector<1x64xi32>
    %c0_i32_6 = arith.constant 0 : i32
    %23 = vector.broadcast %c0_i32_6 : i32 to vector<1x64xi32>
    %24 = arith.cmpi slt, %20, %23 : vector<1x64xi32>
    %c0_i32_7 = arith.constant 0 : i32
    %25 = arith.cmpi slt, %18, %c0_i32_7 : i32
    %26 = vector.broadcast %25 : i1 to vector<1x64xi1>
    %27 = vector.broadcast %26 : vector<1x64xi1> to vector<1x64xi1>
    %28 = arith.xori %24, %27 : vector<1x64xi1>
    %29 = arith.andi %28, %22 : vector<1x64xi1>
    %30 = vector.broadcast %18 : i32 to vector<1x64xi32>
    %31 = arith.addi %20, %30 : vector<1x64xi32>
    %32 = arith.select %29, %31, %20 : vector<1x64xi1>, vector<1x64xi32>
    %33 = arith.subi %16, %32 : vector<1x64xi32>
    %34 = arith.sitofp %33 : vector<1x64xi32> to vector<1x64xf32>
    %cst = arith.constant -0.287823141 : f32
    %35 = vector.broadcast %cst : f32 to vector<1x64xf32>
    %36 = arith.mulf %34, %35 : vector<1x64xf32>
    %37 = math.exp %36 : vector<1x64xf32>
    %38 = arith.sitofp %32 : vector<1x64xi32> to vector<1x64xf32>
    %cst_8 = arith.constant 1.57079637 : f32
    %39 = vector.broadcast %cst_8 : f32 to vector<1x64xf32>
    %40 = arith.mulf %38, %39 : vector<1x64xf32>
    %c8_i32 = arith.constant 8 : i32
    %41 = arith.muli %arg0, %c8_i32 : i32
    %42 = tpu.iota {dimensions = array<i32: 0>} : vector<8x1xi32>
    %43 = vector.broadcast %41 : i32 to vector<8x1xi32>
    %44 = arith.addi %43, %42 : vector<8x1xi32>
    %45 = arith.sitofp %44 : vector<8x1xi32> to vector<8x1xf32>
    %46 = vector.broadcast %45 : vector<8x1xf32> to vector<8x64xf32>
    %47 = vector.broadcast %37 : vector<1x64xf32> to vector<8x64xf32>
    %48 = arith.mulf %46, %47 : vector<8x64xf32>
    %49 = vector.broadcast %40 : vector<1x64xf32> to vector<8x64xf32>
    %50 = arith.addf %48, %49 : vector<8x64xf32>
    %51 = math.sin %50 : vector<8x64xf32>
    %c0 = arith.constant 0 : index
    %c0_9 = arith.constant 0 : index
    %52 = vector.load %arg1[%c0, %c0_9] : memref<8x64xf32, #tpu.memory_space<vmem>>, vector<8x64xf32>
    %53 = arith.addf %52, %51 : vector<8x64xf32>
    %c0_10 = arith.constant 0 : index
    %c0_11 = arith.constant 0 : index
    %54 = vector.load %arg2[%c0_10, %c0_11] : memref<8x64xf32, #tpu.memory_space<vmem>>, vector<8x64xf32>
    tpu.vector_store %arg2[%c0_10, %c0_11], %53 {strides = array<i32>} : memref<8x64xf32, #tpu.memory_space<vmem>>, vector<8x64xf32>,
    return
  }
  func.func @transform_0(%arg0: i32) -> (i32, i32) {
    %c0_i32 = arith.constant 0 : i32
    %c0_i32_0 = arith.constant 0 : i32
    return %arg0, %c0_i32 : i32, i32
  }
  func.func @transform_1(%arg0: i32) -> (i32, i32) {
    %c0_i32 = arith.constant 0 : i32
    %c0_i32_0 = arith.constant 0 : i32
    return %arg0, %c0_i32 : i32, i32
  }
}

</mosaic_0001>

<bundles_post_ra>
// kernel: tpu_custom_call.1
= control target key start
LH: loop header
LB: loop body
LE: loop exit
PB: predicated region body
PF: predicated region fallthrough
CT: control target
= control target key end

     0   :  { %6 = vsyncpa [#allocation3], 0  ;;  %s377_s0 = inlined_call_operand.hbm [shape: f32[8,64], index: 0, kind: input, shape index: {}]   ;;  %s378_s1 = inlined_call_operand.hbm [shape: f32[8,64], index: 1, kind: output, shape index: {}]  }
   0x1   :  { %7 = vsyncpa [#allocation4], 0  ;;  %s13_s8 = sshll.u32 %s377_s0, 4  ;;  %s306_s9 = smov [#allocation2]   ;;  %s14_s8 = int_to_ptr.hbm [resolvable:$true] %s13_s8 }
   0x2   :  { %s15_s10 = sshll.u32 %s306_s9, 4  ;;  %s16_s10 = int_to_ptr.vmem [resolvable:$true] %s15_s10 }
   0x3   :  { %18 = dma.hbm_to_vmem [thread:$0]  %s14_s8, 128, %s16_s10, [#allocation3]  }
   0x4   :  { %302 = dma.done.wait [#allocation3], 128  }
   0x5   :  { %303 = vsyncadd [#allocation3], 4294967168  ;;  %v23_v0 = vlaneseq  ;;  %v307_v26 = vmov 683565275   ;;  %v308_v28 = vmov 2475754826  }
   0x6   :  { %v309_v30 = vmov 2131351028   ;;  %v310_v32 = vmov 2102212464   ;;  %v311_v34 = vmov 920167782  }
   0x7   :  { %v24_v1 = vand.u32 127, %v23_v0  ;;  %v58_v8 = vshrl.u32 %v23_v0, 7  ;;  %v312_v40 = vmov 1326507024   ;;  %s314_s0 = smov [#allocation5]   ;;  %s230_s14 = sshll.u32 %s378_s1, 4  ;;  %s231_s14 = int_to_ptr.hbm [resolvable:$true] %s230_s14 }
   0x8   :  { %s228_s11 = sshll.u32 %s314_s0, 4  ;;  %s229_s11 = int_to_ptr.vmem [resolvable:$true] %s228_s11 }
   0x9   :  { %v29_v2 = vand.u32 31, %v24_v1  ;;  %v61_v10 = vcvt.s32.f32 %v58_v8 }
   0xb   :  { %v41_v3 = vand.u32 1, %v29_v2 }
   0xd   :  { %v49_v4 = vsub.s32 %v29_v2, %v41_v3  ;;  %v54_v9 = vcvt.s32.f32 %v41_v3 }
   0xf   :  { %v50_v5 = vcvt.s32.f32 %v49_v4  ;;  %v55_v11 = vmul.f32 1.5707964, %v54_v9 }
  0x11   :  { %v51_v6 = vmul.f32 -0.28782314, %v50_v5 }
  0x13   :  { %v52_v7 = vmul.f32 1.442695, %v51_v6 }
  0x15   :  { %252 = vpow2.f32 %v52_v7 }
  0x1b   :  { %v253_v12 = vpop.eup %252 }
  0x1c   :  { %v62_v13 = vmul.f32 %v253_v12, %v61_v10 }
  0x1e   :  { %v328_v14 = vadd.f32 %v62_v13, %v55_v11 }
  0x20   :  { %v67_v15 = vand.u32 2139095040, %v328_v14  ;;  %v64_v17 = vand.u32 2147483647, %v328_v14  ;;  %vm66_vm12 = vcmp.lt.s32.totalorder %v328_v14, 0 }
  0x22   :  { %v68_v16 = vshrl.u32 %v67_v15, 23  ;;  %v71_v20 = vand.u32 8388607, %v64_v17  ;;  %v313_v15 = vmov 0   ;;  %vm65_vm13 = vcmp.le.f32.partialorder %v64_v17, 0.7853982 }
  0x24   :  { %v240_v18 = vadd.s32 4294967169, %v68_v16  ;;  %v72_v23 = vor.u32 8388608, %v71_v20 }
  0x26   :  { %v74_v19 = vadd.s32 1, %v240_v18  ;;  %v337_v42 = vshll.u32 %v72_v23, 8 }
  0x28   :  { %vm75_vm0 = vcmp.gt.s32.totalorder %v74_v19, 0  ;;  %v113_v54 = vand.u32 65535, %v337_v42  ;;  %v114_v55 = vshrl.u32 %v337_v42, 16 }
  0x29   :  { %v76_v21 = vsel %vm75_vm0, %v74_v19, 0 }
  0x2a   :  { %v78_v22 = vand.u32 31, %v76_v21  ;;  %v334_v24 = vshrl.u32 %v76_v21, 5 }
  0x2c   :  { %v79_v25 = vsub.s32 32, %v78_v22  ;;  %v81_v27 = vshll.u32 %v307_v26, %v78_v22  ;;  %v84_v29 = vshll.u32 %v308_v28, %v78_v22  ;;  %v87_v31 = vshll.u32 %v309_v30, %v78_v22 }
  0x2d   :  { %v90_v33 = vshll.u32 %v310_v32, %v78_v22  ;;  %v93_v35 = vshll.u32 %v311_v34, %v78_v22  ;;  %vm96_vm1 = vcmp.lt.s32.totalorder %v334_v24, 1  ;;  %vm99_vm2 = vcmp.lt.s32.totalorder %v334_v24, 4 }
  0x2e   :  { %v82_v36 = vshrl.u32 %v308_v28, %v79_v25  ;;  %v85_v37 = vshrl.u32 %v309_v30, %v79_v25  ;;  %v88_v38 = vshrl.u32 %v310_v32, %v79_v25  ;;  %v91_v39 = vshrl.u32 %v311_v34, %v79_v25 }
  0x2f   :  { %v94_v41 = vshrl.u32 %v312_v40, %v79_v25  ;;  %vm98_vm3 = vcmp.lt.s32.totalorder %v334_v24, 3  ;;  %vm97_vm4 = vcmp.lt.s32.totalorder %v334_v24, 2  ;;  %v80_v62 = vshrl.u32 %v307_v26, %v79_v25 }
  0x30   :  { %v83_v43 = vor.u32 %v82_v36, %v81_v27  ;;  %v86_v44 = vor.u32 %v85_v37, %v84_v29  ;;  %v89_v45 = vor.u32 %v88_v38, %v87_v31  ;;  %v92_v46 = vor.u32 %v91_v39, %v90_v33 }
  0x31   :  { %v95_v47 = vor.u32 %v94_v41, %v93_v35 }
  0x32   :  { %v104_v48 = vsel %vm96_vm1, %v83_v43, %v86_v44  ;;  %v108_v49 = vsel %vm96_vm1, %v86_v44, %v89_v45  ;;  %v105_v50 = vsel %vm99_vm2, %v92_v46, 920167782  ;;  %v100_v11 = vsel %vm96_vm1, %v80_v62, %v83_v43 }
  0x33   :  { %v109_v51 = vsel %vm99_vm2, %v95_v47, 1326507024  ;;  %v106_v52 = vsel %vm98_vm3, %v89_v45, %v105_v50  ;;  %v101_v13 = vsel %vm99_vm2, %v89_v45, 2102212464  ;;  %vm207_vm1 = vweird.f32 %v328_v14 }
  0x34   :  { %v110_v53 = vsel %vm98_vm3, %v92_v46, %v109_v51  ;;  %v107_v56 = vsel %vm97_vm4, %v104_v48, %v106_v52  ;;  %v102_v26 = vsel %vm98_vm3, %v86_v44, %v101_v13  ;;  %vm221_vm2 = vcmask 523264  }
  0x35   :  { %v111_v57 = vsel %vm97_vm4, %v108_v49, %v110_v53  ;;  %v137_v60 = vand.u32 65535, %v107_v56  ;;  %v138_v61 = vshrl.u32 %v107_v56, 16  ;;  %v103_v34 = vsel %vm97_vm4, %v100_v11, %v102_v26  ;;  %v219_v26 = vld [vmem:[#allocation2] sm:$0xff] }
  0x36   :  { %v115_v58 = vand.u32 65535, %v111_v57  ;;  %v116_v59 = vshrl.u32 %v111_v57, 16  ;;  %v157_v38 = vmul.u32 %v337_v42, %v103_v34 }
  0x37   :  { %v139_v2 = vmul.u32 %v137_v60, %v113_v54  ;;  %v140_v3 = vmul.u32 %v138_v61, %v113_v54  ;;  %v141_v4 = vmul.u32 %v137_v60, %v114_v55  ;;  %v142_v8 = vmul.u32 %v138_v61, %v114_v55 }
  0x38   :  { %v117_v63 = vmul.u32 %v115_v58, %v113_v54  ;;  %v118_v0 = vmul.u32 %v116_v59, %v113_v54  ;;  %v119_v1 = vmul.u32 %v115_v58, %v114_v55  ;;  %v120_v5 = vmul.u32 %v116_v59, %v114_v55 }
  0x39   :  { %v143_v9 = vshll.u32 %v140_v3, 16  ;;  %v145_v10 = vshll.u32 %v141_v4, 16  ;;  %v144_v23 = vshrl.u32 %v140_v3, 16  ;;  %v146_v30 = vshrl.u32 %v141_v4, 16 }
  0x3a   :  { %v121_v6 = vshll.u32 %v118_v0, 16  ;;  %v123_v7 = vshll.u32 %v119_v1, 16  ;;  %v122_v19 = vshrl.u32 %v118_v0, 16  ;;  %v124_v27 = vshrl.u32 %v119_v1, 16 }
  0x3b   :  { %vm147_vm6 = vc.u32 %v139_v2, %v143_v9  ;;  %v149_v18 = vadd.s32 %v143_v9, %v139_v2 }
  0x3c   :  { %vm125_vm5 = vc.u32 %v117_v63, %v121_v6  ;;  %v127_v12 = vadd.s32 %v121_v6, %v117_v63  ;;  %v148_v21 = vsel %vm147_vm6, 1, %v313_v15 }
  0x3d   :  { %v126_v16 = vsel %vm125_vm5, 1, %v313_v15  ;;  %v150_v25 = vadd.s32 %v148_v21, %v142_v8  ;;  %vm151_vm8 = vc.u32 %v149_v18, %v145_v10  ;;  %v153_v33 = vadd.s32 %v149_v18, %v145_v10 }
  0x3e   :  { %v128_v20 = vadd.s32 %v126_v16, %v120_v5  ;;  %vm129_vm7 = vc.u32 %v127_v12, %v123_v7  ;;  %v152_v29 = vsel %vm151_vm8, 1, %v313_v15 }
  0x3f   :  { %v130_v22 = vsel %vm129_vm7, 1, %v313_v15  ;;  %v154_v31 = vadd.s32 %v152_v29, %v150_v25 }
  0x40   :  { %v132_v28 = vadd.s32 %v130_v22, %v128_v20 }
  0x41   :  { %v155_v35 = vadd.s32 %v154_v31, %v144_v23 }
  0x42   :  { %v133_v32 = vadd.s32 %v132_v28, %v122_v19 }
  0x43   :  { %v156_v37 = vadd.s32 %v155_v35, %v146_v30 }
  0x44   :  { %v134_v36 = vadd.s32 %v133_v32, %v124_v27 }
  0x45   :  { %v160_v39 = vadd.s32 1, %v156_v37 }
  0x46   :  { %vm159_vm9 = vc.u32 %v134_v36, %v153_v33  ;;  %v158_v24 = vadd.s32 %v153_v33, %v134_v36 }
  0x47   :  { %v161_v40 = vsel %vm159_vm9, %v160_v39, %v156_v37 }
  0x48   :  { %v162_v41 = vadd.s32 %v161_v40, %v157_v38 }
  0x4a   :  { %v163_v43 = vadd.s32 536870912, %v162_v41 }
  0x4c   :  { %v164_v44 = vshrl.u32 %v163_v43, 30 }
  0x4e   :  { %v165_v45 = vshll.u32 %v164_v44, 30  ;;  %v188_v62 = vsub.s32 4, %v164_v44 }
  0x50   :  { %v166_v46 = vsub.s32 %v162_v41, %v165_v45  ;;  %v189_v1 = vsel %vm66_vm12, %v188_v62, %v164_v44 }
  0x51   :  { %v191_v4 = vsel %vm65_vm13, 0, %v189_v1 }
  0x52   :  { %vm167_vm10 = vcmp.lt.s32.totalorder %v166_v46, 0  ;;  %v168_v47 = vsub.s32 0, %v166_v46  ;;  %v208_v9 = vadd.s32 3, %v191_v4 }
  0x54   :  { %v169_v48 = vsel %vm167_vm10, %v168_v47, %v166_v46  ;;  %v209_v15 = vand.u32 3, %v208_v9 }
  0x55   :  { %v170_v49 = vclz %v169_v48 }
  0x56   :  { %vm214_vm14 = vcmp.eq.s32.totalorder %v209_v15, 2  ;;  %vm211_vm15 = vcmp.eq.s32.totalorder %v209_v15, 0  ;;  %vm210_vm0 = vcmp.lt.s32.totalorder %v209_v15, 2 }
  0x57   :  { %v241_v50 = vadd.s32 4294967294, %v170_v49 }
  0x59   :  { %vm242_vm11 = vcmp.lt.s32.totalorder %v241_v50, 0 }
  0x5a   :  { %v173_v51 = vsel %vm242_vm11, 0, %v241_v50 }
  0x5b   :  { %v174_v52 = vsub.s32 32, %v173_v51  ;;  %v175_v53 = vshll.u32 %v166_v46, %v173_v51  ;;  %v178_v54 = vsub.s32 4294967266, %v173_v51 }
  0x5d   :  { %v176_v42 = vshrl.u32 %v158_v24, %v174_v52  ;;  %v179_v55 = vadd.s32 127, %v178_v54 }
  0x5f   :  { %v177_v56 = vor.u32 %v176_v42, %v175_v53  ;;  %v180_v57 = vshll.u32 %v179_v55, 23 }
  0x61   :  { %v181_v58 = vor.u32 4788187, %v180_v57  ;;  %v184_v59 = vcvt.s32.f32 %v177_v56 }
  0x63   :  { %v182_v60 = vand.u32 2147483647, %v181_v58 }
  0x65   :  { %v185_v61 = vmul.f32 %v184_v59, %v182_v60 }
  0x67   :  { %v186_v63 = vxor.u32 2147483648, %v185_v61 }
  0x69   :  { %v187_v0 = vsel %vm66_vm12, %v186_v63, %v185_v61 }
  0x6a   :  { %v190_v2 = vsel %vm65_vm13, %v328_v14, %v187_v0 }
  0x6b   :  { %v192_v3 = vmul.f32 %v190_v2, %v190_v2 }
  0x6d   :  { %v193_v5 = vmul.f32 -0.001358992, %v192_v3  ;;  %v200_v6 = vmul.f32 -0.00019511016, %v192_v3 }
  0x6f   :  { %v194_v7 = vadd.f32 0.041655596, %v193_v5  ;;  %v201_v8 = vadd.f32 0.008332121, %v200_v6 }
  0x71   :  { %v195_v10 = vmul.f32 %v194_v7, %v192_v3  ;;  %v202_v11 = vmul.f32 %v201_v8, %v192_v3 }
  0x73   :  { %v196_v12 = vadd.f32 -0.4999988, %v195_v10  ;;  %v203_v13 = vadd.f32 -0.16666654, %v202_v11 }
  0x75   :  { %v197_v16 = vmul.f32 %v196_v12, %v192_v3  ;;  %v204_v18 = vmul.f32 %v203_v13, %v192_v3 }
  0x77   :  { %v198_v17 = vadd.f32 1.0, %v197_v16  ;;  %v205_v19 = vadd.f32 1.0, %v204_v18 }
  0x79   :  { %v206_v20 = vmul.f32 %v205_v19, %v190_v2  ;;  %v215_v21 = vxor.u32 2147483648, %v198_v17 }
  0x7b   :  { %v212_v22 = vxor.u32 2147483648, %v206_v20  ;;  %v216_v23 = vsel %vm214_vm14, %v215_v21, %v206_v20 }
  0x7d   :  { %v213_v25 = vsel %vm211_vm15, %v198_v17, %v212_v22 }
  0x7e   :  { %v217_v27 = vsel %vm210_vm0, %v213_v25, %v216_v23 }
  0x7f   :  { %v218_v28 = vsel %vm207_vm1, nan, %v217_v27 }
  0x80   :  { %v220_v29 = vadd.f32 %v219_v26, %v218_v28 }
  0x82   :  { %222 = vst.msk [vmem:[#allocation5] sm:$0xff] %vm221_vm2, %v220_v29 }
  0x83   :  { %233 = dma.vmem_to_hbm [thread:$0]  %s229_s11, 128, %s231_s14, [#allocation4]  }
  0x84   :  { %304 = dma.done.wait [#allocation4], 128  }
  0x85   :  { %305 = vsyncadd [#allocation4], 4294967168 }
  0x86   :  { %238 = vsyncpa [#allocation3], 1 }
  0x87   :  { %239 = vsyncpa [#allocation4], 1 }

</bundles_post_ra>
